<compile_context>
chip_gen: v5e
topology: v5e:2x2
jax: 0.10.0
libtpu: 0.0.40
codegen_flags: <defaults>
</compile_context>

<pallas_src>
import functools

import jax
import jax.numpy as jnp
from jax.experimental import pallas as pl
from jax.experimental.pallas import tpu as pltpu

HIDDEN = 64   # mid_layer_out_features in Inputspace
OUT = 2       # mu_move output features
IN_VEL = 2    # velocity / goal feature width

# Row offsets inside the packed (rows, HIDDEN) parameter buffer.
R_W1 = 0                  # rows 0..3   : W1 (4, 64)
R_B1 = 4                  # row  4      : b1 (64,)
R_B2 = 5                  # row  5      : b2 (64,)
R_B3 = 6                  # row  6      : b3 (2,) in lanes 0..1
R_W2 = 8                  # rows 8..71  : W2 (64, 64)   (8-aligned)
R_W3 = R_W2 + HIDDEN      # rows 72..   : W3 as (OUT*T, 64), row = o*T + t


def pack_params(params, time_steps):
    """Pack all Linear weights/biases into one lane-dense f32 buffer.

    Done once at init / param-update time (not per forward call).
    """
    w1, b1, w2, b2, w3, b3, _log_std = params
    T = time_steps
    rows = R_W3 + OUT * T
    rows_padded = ((rows + 7) // 8) * 8          # keep sublane-tile alignment
    buf = jnp.zeros((rows_padded, HIDDEN), jnp.float32)
    buf = buf.at[R_W1:R_W1 + 2 * IN_VEL, :].set(w1.astype(jnp.float32))
    buf = buf.at[R_B1, :].set(b1.astype(jnp.float32))
    buf = buf.at[R_B2, :].set(b2.astype(jnp.float32))
    buf = buf.at[R_B3, :OUT].set(b3.astype(jnp.float32))
    buf = buf.at[R_W2:R_W2 + HIDDEN, :].set(w2.astype(jnp.float32))
    # (T*HIDDEN, OUT) -> (OUT, T, HIDDEN) -> rows o*T + t, lanes h.
    w3r = (w3.astype(jnp.float32)
           .reshape(T, HIDDEN, OUT)
           .transpose(2, 0, 1)
           .reshape(OUT * T, HIDDEN))
    buf = buf.at[R_W3:R_W3 + OUT * T, :].set(w3r)
    return buf


def actor_kernel(vel_ref, goal_ref, p_ref, mu_ref, *, batch, time_steps):
    """Single-shot kernel: whole forward pass for all B*T rows."""
    B, T = batch, time_steps

    vel = vel_ref[...]                           # (B*T, 2)
    goal = goal_ref[...]                         # (B*T, 2)
    delta = goal - vel                           # fused delta

    # Layer 1: concat([vel, delta], -1) @ W1 == vel @ W1[:2] + delta @ W1[2:].
    # Two tiny-K MXU pushes (exact original numerics), MXU is idle here.
    w1 = p_ref[R_W1:R_W1 + 2 * IN_VEL, :]        # (4, 64)
    b1 = p_ref[R_B1:R_B1 + 1, :]                 # (1, 64), broadcasts
    h1 = (jnp.dot(vel, w1[0:IN_VEL, :], preferred_element_type=jnp.float32)
          + jnp.dot(delta, w1[IN_VEL:2 * IN_VEL, :],
                    preferred_element_type=jnp.float32)
          + b1)
    h1 = jnp.maximum(h1, 0.0)                    # (B*T, 64)

    # Layer 2: 64x64 -> MXU.
    w2 = p_ref[R_W2:R_W2 + HIDDEN, :]            # (64, 64), tile-aligned slice
    b2 = p_ref[R_B2:R_B2 + 1, :]                 # (1, 64)
    h2 = jnp.maximum(
        jnp.dot(h1, w2, preferred_element_type=jnp.float32) + b2, 0.0)

    # Final projection: flatten(h2, start_dim=1) @ W3, with W3 pre-laid-out as
    # (OUT, T, HIDDEN).  Evaluate as a VPU multiply + lane-reduce over HIDDEN
    # + reduce over T (both output columns at once) — no tiny MXU pushes, no
    # cross-lane (B*T,64)->(B,T*64) relayout.
    h2_3d = h2.reshape(B, T, HIDDEN)                          # leading-dim split
    w3 = p_ref[R_W3:R_W3 + OUT * T, :].reshape(OUT, T, HIDDEN)
    prod = h2_3d[:, None, :, :] * w3[None, :, :, :]           # (B, OUT, T, H)
    acc = jnp.sum(jnp.sum(prod, axis=-1), axis=-1)            # (B, OUT)

    b3 = p_ref[R_B3:R_B3 + 1, :][:, 0:OUT]                    # (1, OUT)
    mu_ref[...] = jnp.tanh(acc + b3)                          # (B, OUT)


@jax.jit
def actor_forward(velocity, goal, packed_params, log_std):
    """mu, var = Actor((velocity, goal)); mu via a single Pallas kernel."""
    B, T, _ = velocity.shape
    vel2d = velocity.astype(jnp.float32).reshape(B * T, IN_VEL)
    goal2d = goal.astype(jnp.float32).reshape(B * T, IN_VEL)

    vmem = pl.BlockSpec(memory_space=pltpu.MemorySpace.VMEM)
    mu = pl.pallas_call(
        functools.partial(actor_kernel, batch=B, time_steps=T),
        out_shape=jax.ShapeDtypeStruct((B, OUT), jnp.float32),
        in_specs=[vmem, vmem, vmem],
        out_specs=vmem,
    )(vel2d, goal2d, packed_params)

    # Parameter-only elementwise tail (no data dependence) kept in plain JAX.
    std = jnp.exp(log_std)
    var = std ** 2
    return mu, var


def reference_forward(velocity, goal, params):
    """Pure-JAX reference mirroring the PyTorch module."""
    w1, b1, w2, b2, w3, b3, log_std = params
    delta = goal - velocity
    x = jnp.concatenate([velocity, delta], axis=-1)
    h = jax.nn.relu(x @ w1 + b1)
    h = jax.nn.relu(h @ w2 + b2)
    flat = h.reshape(velocity.shape[0], -1)
    mu = jnp.tanh(flat @ w3 + b3)
    var = jnp.exp(log_std) ** 2
    return mu, var


def init_params(key, time_steps):
    """Deterministic synthetic parameter init (shapes match the nn.Module)."""
    k1, k2, k3 = jax.random.split(key, 3)
    w1 = jax.random.normal(k1, (4, HIDDEN), jnp.float32) * 0.1
    b1 = jnp.zeros((HIDDEN,), jnp.float32)
    w2 = jax.random.normal(k2, (HIDDEN, HIDDEN), jnp.float32) * 0.1
    b2 = jnp.zeros((HIDDEN,), jnp.float32)
    w3 = jax.random.normal(k3, (time_steps * HIDDEN, OUT), jnp.float32) * 0.05
    b3 = jnp.zeros((OUT,), jnp.float32)
    log_std = jnp.zeros((OUT,), jnp.float32)   # nn.Parameter(torch.zeros(2))
    return (w1, b1, w2, b2, w3, b3, log_std)


if __name__ == "__main__":
    B = 2           # batch
    T = 8           # time_steps

    key = jax.random.PRNGKey(0)
    kp, kv, kg = jax.random.split(key, 3)
    params = init_params(kp, T)
    packed = pack_params(params, T)          # done once, outside the hot path

    velocity = jax.random.normal(kv, (B, T, 2), jnp.float32)
    goal = jax.random.normal(kg, (B, T, 2), jnp.float32)

    mu, var = actor_forward(velocity, goal, packed, params[-1])
    mu, var = jax.block_until_ready((mu, var))

    mu_ref, var_ref = reference_forward(velocity, goal, params)
    assert jnp.allclose(mu, mu_ref, atol=1e-5, rtol=1e-5), (mu, mu_ref)
    assert jnp.allclose(var, var_ref, atol=1e-6), (var, var_ref)

    print("KERNEL_OK")
</pallas_src>

<mosaic_0001>
module attributes {stable_mosaic.version = 11 : i64} {
  func.func @actor_kernel(%arg0: memref<16x2xf32, #tpu.memory_space<vmem>>, %arg1: memref<16x2xf32, #tpu.memory_space<vmem>>, %arg2: memref<88x64xf32, #tpu.memory_space<vmem>>, %arg3: memref<2x2xf32, #tpu.memory_space<vmem>>) attributes {dimension_semantics = [], scalar_prefetch = 0 : i64, scratch_operands = 0 : i64, tpu.core_type = #tpu.core_type<tc>} {
    %c0 = arith.constant 0 : index
    %c0_0 = arith.constant 0 : index
    %0 = vector.load %arg0[%c0, %c0_0] : memref<16x2xf32, #tpu.memory_space<vmem>>, vector<16x2xf32>
    %c0_1 = arith.constant 0 : index
    %c0_2 = arith.constant 0 : index
    %1 = vector.load %arg1[%c0_1, %c0_2] : memref<16x2xf32, #tpu.memory_space<vmem>>, vector<16x2xf32>
    %2 = arith.subf %1, %0 : vector<16x2xf32>
    %c0_3 = arith.constant 0 : index
    %c0_4 = arith.constant 0 : index
    %3 = vector.load %arg2[%c0_3, %c0_4] : memref<88x64xf32, #tpu.memory_space<vmem>>, vector<4x64xf32>
    %c4 = arith.constant 4 : index
    %c0_5 = arith.constant 0 : index
    %4 = vector.load %arg2[%c4, %c0_5] : memref<88x64xf32, #tpu.memory_space<vmem>>, vector<1x64xf32>
    %5 = vector.extract_strided_slice %3 {offsets = [0, 0], sizes = [2, 64], strides = [1, 1]} : vector<4x64xf32> to vector<2x64xf32>
    %cst = arith.constant dense<0.000000e+00> : vector<16x64xf32>
    %6 = tpu.matmul %0, %5, %cst {dimension_numbers = #tpu.dot_dimension_numbers<[1], [0], [0], [1], [0, 0, 1, 1], [], []>} : vector<16x2xf32>, vector<2x64xf32>, vector<16x64xf32> -> vector<16x64xf32>
    %7 = vector.extract_strided_slice %3 {offsets = [2, 0], sizes = [2, 64], strides = [1, 1]} : vector<4x64xf32> to vector<2x64xf32>
    %cst_6 = arith.constant dense<0.000000e+00> : vector<16x64xf32>
    %8 = tpu.matmul %2, %7, %cst_6 {dimension_numbers = #tpu.dot_dimension_numbers<[1], [0], [0], [1], [0, 0, 1, 1], [], []>} : vector<16x2xf32>, vector<2x64xf32>, vector<16x64xf32> -> vector<16x64xf32>
    %9 = arith.addf %6, %8 : vector<16x64xf32>
    %10 = vector.broadcast %4 : vector<1x64xf32> to vector<16x64xf32>
    %11 = arith.addf %9, %10 : vector<16x64xf32>
    %cst_7 = arith.constant 0.000000e+00 : f32
    %12 = vector.broadcast %cst_7 : f32 to vector<16x64xf32>
    %13 = arith.maximumf %11, %12 : vector<16x64xf32>
    %c8 = arith.constant 8 : index
    %c0_8 = arith.constant 0 : index
    %14 = vector.load %arg2[%c8, %c0_8] : memref<88x64xf32, #tpu.memory_space<vmem>>, vector<64x64xf32>
    %c5 = arith.constant 5 : index
    %c0_9 = arith.constant 0 : index
    %15 = vector.load %arg2[%c5, %c0_9] : memref<88x64xf32, #tpu.memory_space<vmem>>, vector<1x64xf32>
    %cst_10 = arith.constant dense<0.000000e+00> : vector<16x64xf32>
    %16 = tpu.matmul %13, %14, %cst_10 {dimension_numbers = #tpu.dot_dimension_numbers<[1], [0], [0], [1], [0, 0, 1, 1], [], []>} : vector<16x64xf32>, vector<64x64xf32>, vector<16x64xf32> -> vector<16x64xf32>
    %17 = vector.broadcast %15 : vector<1x64xf32> to vector<16x64xf32>
    %18 = arith.addf %16, %17 : vector<16x64xf32>
    %cst_11 = arith.constant 0.000000e+00 : f32
    %19 = vector.broadcast %cst_11 : f32 to vector<16x64xf32>
    %20 = arith.maximumf %18, %19 : vector<16x64xf32>
    %21 = vector.shape_cast %20 : vector<16x64xf32> to vector<2x8x64xf32>
    %c72 = arith.constant 72 : index
    %c0_12 = arith.constant 0 : index
    %22 = vector.load %arg2[%c72, %c0_12] : memref<88x64xf32, #tpu.memory_space<vmem>>, vector<16x64xf32>
    %23 = vector.shape_cast %22 : vector<16x64xf32> to vector<2x8x64xf32>
    %24 = vector.shape_cast %21 : vector<2x8x64xf32> to vector<2x1x8x64xf32>
    %25 = vector.shape_cast %23 : vector<2x8x64xf32> to vector<1x2x8x64xf32>
    %26 = vector.broadcast %24 : vector<2x1x8x64xf32> to vector<2x2x8x64xf32>
    %27 = vector.broadcast %25 : vector<1x2x8x64xf32> to vector<2x2x8x64xf32>
    %28 = arith.mulf %26, %27 : vector<2x2x8x64xf32>
    %cst_13 = arith.constant dense<0.000000e+00> : vector<2x2x8xf32>
    %29 = vector.multi_reduction <add>, %28, %cst_13 [3] : vector<2x2x8x64xf32> to vector<2x2x8xf32>
    %cst_14 = arith.constant dense<0.000000e+00> : vector<2x2xf32>
    %30 = vector.multi_reduction <add>, %29, %cst_14 [2] : vector<2x2x8xf32> to vector<2x2xf32>
    %c6 = arith.constant 6 : index
    %c0_15 = arith.constant 0 : index
    %31 = vector.load %arg2[%c6, %c0_15] : memref<88x64xf32, #tpu.memory_space<vmem>>, vector<1x64xf32>
    %32 = vector.extract_strided_slice %31 {offsets = [0, 0], sizes = [1, 2], strides = [1, 1]} : vector<1x64xf32> to vector<1x2xf32>
    %33 = vector.broadcast %32 : vector<1x2xf32> to vector<2x2xf32>
    %34 = arith.addf %30, %33 : vector<2x2xf32>
    %35 = math.tanh %34 : vector<2x2xf32>
    %c0_16 = arith.constant 0 : index
    %c0_17 = arith.constant 0 : index
    %36 = vector.load %arg3[%c0_16, %c0_17] : memref<2x2xf32, #tpu.memory_space<vmem>>, vector<2x2xf32>
    tpu.vector_store %arg3[%c0_16, %c0_17], %35 {strides = array<i32>} : memref<2x2xf32, #tpu.memory_space<vmem>>, vector<2x2xf32>,
    return
  }
}

</mosaic_0001>

<bundles_post_ra>
// kernel: actor_forward.1
= control target key start
LH: loop header
LB: loop body
LE: loop exit
PB: predicated region body
PF: predicated region fallthrough
CT: control target
= control target key end

     0   :  { %vm32_vm0 = vcmask 1041408   ;;  %vm25_vm1 = vcmask 15360   ;;  %s367_s0 = inlined_call_operand.vmem [shape: f32[16,2], index: 0, kind: input, shape index: {}]   ;;  %s368_s1 = inlined_call_operand.vmem [shape: f32[16,2], index: 1, kind: input, shape index: {}]   ;;  %s369_s2 = inlined_call_operand.vmem [shape: f32[88,64], index: 2, kind: input, shape index: {}]   ;;  %s370_s3 = inlined_call_operand.hbm [shape: f32[2,2], index: 3, kind: output, shape index: {}]  }
   0x1   :  { %v21_v0 = vld [vmem:[%s369_s2] sm:$0xf]  ;;  %v100_v6 = vld [vmem:[%s369_s2 + $0x38] sm:$0xff]  ;;  %v99_v7 = vld [vmem:[%s369_s2 + $0x30] sm:$0xff] }
   0x2   :  { %v15_v1 = vld [vmem:[%s367_s0] sm:$0xff]  ;;  %v24_v3 = vrot.slane %v21_v0, 2  ;;  %223 = vmatpush.msk.msra.mxu1 %vm32_vm0, %v21_v0 }
   0x3   :  { %v17_v2 = vld [vmem:[%s368_s1] sm:$0xff]  ;;  %224 = vmatmul.msk.f32.vlgmr.msra.gmra.mxu1 %vm25_vm1, %v15_v1 }
   0x4   :  { %v19_v4 = vsub.f32 %v17_v2, %v15_v1  ;;  %v101_v5 = vld [vmem:[%s369_s2 + $0x40] sm:$0xff]  ;;  %220 = vmatpush.msk.msra.mxu0 %vm32_vm0, %v24_v3 }
   0x5   :  { %119 = vmatpush.msra.mxu2 %v101_v5  ;;  %228 = vmatpush.msra.mxu3 %v101_v5 }
   0x6   :  { %221 = vmatmul.msk.f32.vlgmr.msra.gmra.mxu0 %vm25_vm1, %v19_v4 }
   0x7   :  { %120 = vmatpush.msra.mxu2 %v100_v6 }
   0x8   :  { %8 = vsyncpa [#allocation3], 0  ;;  %v16_v8 = vld [vmem:[%s367_s0 + $0x8] sm:$0xff]  ;;  %229 = vmatpush.msra.mxu3 %v100_v6  ;;  %v97_v12 = vld [vmem:[%s369_s2 + $0x20] sm:$0xff]  ;;  %vm104_vm2 = vcmask 523264   ;;  %v158_v44 = vlaneseq  ;;  %vm164_vm3 = vcmask 1041409  }
   0x9   :  { %v18_v9 = vld [vmem:[%s368_s1 + $0x8] sm:$0xff]  ;;  %121 = vmatpush.msra.mxu2 %v99_v7  ;;  %v96_v13 = vld [vmem:[%s369_s2 + $0x18] sm:$0xff]  ;;  %v95_v14 = vld [vmem:[%s369_s2 + $0x10] sm:$0xff]  ;;  %vm169_vm4 = vcmask 58368   ;;  %v275_v60 = vmov 0   ;;  %s211_s22 = sshll.u32 %s370_s3, 4  ;;  %s212_s22 = int_to_ptr.hbm [resolvable:$true] %s211_s22 }
   0xa   :  { %v98_v10 = vld [vmem:[%s369_s2 + $0x28] sm:$0xff]  ;;  %230 = vmatpush.msra.mxu3 %v99_v7  ;;  %v20_v11 = vsub.f32 %v18_v9, %v16_v8  ;;  %v242_v17 = vld [vmem:[%s369_s2 + $0x4] ss:$0 sm:$0xff]  ;;  %v243_v27 = vld [vmem:[%s369_s2 + $0x5] ss:$0 sm:$0xff]  ;;  %v180_v45 = vshrl.u32 %v158_v44, 7  ;;  %239 = vset.pattern.permute.xlu1 %v275_v60 }
   0xb   :  { %122 = vmatpush.msra.mxu2 %v98_v10  ;;  %225 = vmatmul.msk.f32.gmra.mxu1 %vm25_vm1, %v16_v8  ;;  %v94_v15 = vld [vmem:[%s369_s2 + $0x8] sm:$0xff]  ;;  %v137_v35 = vld [vmem:[%s369_s2 + $0x50] sm:$0xff]  ;;  %v244_v46 = vld [vmem:[%s369_s2 + $0x6] ss:$0 sm:$0xff]  ;;  %v159_v48 = vand.u32 127, %v158_v44  ;;  %vm202_vm5 = vcmask 9216  }
   0xc   :  { %231 = vmatpush.msra.mxu3 %v98_v10  ;;  %v136_v30 = vld [vmem:[%s369_s2 + $0x48] sm:$0xff]  ;;  %238 = vset.pattern.permute.xlu0 %v180_v45  ;;  %s276_s2 = smov [#allocation2]  }
   0xd   :  { %123 = vmatpush.msra.mxu2 %v97_v12  ;;  %240 = vset.pattern.permute.xlu2 %v275_v60  ;;  %s209_s19 = sshll.u32 %s276_s2, 4  ;;  %s210_s19 = int_to_ptr.vmem [resolvable:$true] %s209_s19 }
   0xe   :  { %222 = vmatmul.msk.f32.gmra.mxu0 %vm25_vm1, %v20_v11  ;;  %232 = vmatpush.msra.mxu3 %v97_v12 }
   0xf   :  { %124 = vmatpush.msra.mxu2 %v96_v13 }
  0x10   :  { %233 = vmatpush.msra.mxu3 %v96_v13 }
  0x11   :  { %125 = vmatpush.msra.mxu2 %v95_v14 }
  0x12   :  { %234 = vmatpush.msra.mxu3 %v95_v14 }
  0x13   :  { %126 = vmatpush.msra.mxu2 %v94_v15 }
  0x14   :  { %235 = vmatpush.msra.mxu3 %v94_v15 }
  0x80   :  { %v83_v16 = vpop.f32.mrf.mxu1 }
  0x83   :  { %v52_v18 = vpop.f32.mrf.mxu0 }
  0x84   :  { %v84_v19 = vadd.f32 %v83_v16, %v52_v18 }
  0x86   :  { %v90_v20 = vadd.f32 %v242_v17, %v84_v19 }
  0x88   :  { %v92_v21 = vmax.f32 %v90_v20, 0.0  ;;  %v86_v22 = vpop.f32.mrf.mxu1 }
  0x8a   :  { %226 = vmatmul.msk.f32.vlgmr.msra.gmra.mxu2 %vm104_vm2, %v92_v21 }
  0x8b   :  { %v55_v23 = vpop.f32.mrf.mxu0 }
  0x8c   :  { %v87_v24 = vadd.f32 %v86_v22, %v55_v23 }
  0x8e   :  { %v91_v25 = vadd.f32 %v242_v17, %v87_v24 }
  0x90   :  { %v93_v26 = vmax.f32 %v91_v25, 0.0 }
  0x92   :  { %227 = vmatmul.msk.f32.vlgmr.msra.gmra.mxu3 %vm104_vm2, %v93_v26 }
 0x10d   :  { %v128_v28 = vpop.f32.mrf.mxu2 }
 0x10e   :  { %v129_v29 = vadd.f32 %v243_v27, %v128_v28 }
 0x110   :  { %v134_v31 = vmax.f32 %v129_v29, 0.0 }
 0x112   :  { %v138_v32 = vmul.f32 %v136_v30, %v134_v31  ;;  %v139_v38 = vmul.f32 %v137_v35, %v134_v31 }
 0x114   :  { %v142_v33 = vsel %vm104_vm2, %v138_v32, 0.0  ;;  %v145_v40 = vsel %vm104_vm2, %v139_v38, 0.0 }
 0x115   :  { %143 = vadd.xlane.f32.xlu0 %v142_v33  ;;  %v131_v34 = vpop.f32.mrf.mxu3 }
 0x116   :  { %v132_v36 = vadd.f32 %v243_v27, %v131_v34 }
 0x118   :  { %v135_v37 = vmax.f32 %v132_v36, 0.0 }
 0x11a   :  { %v140_v39 = vmul.f32 %v136_v30, %v135_v37  ;;  %v141_v42 = vmul.f32 %v137_v35, %v135_v37 }
 0x11c   :  { %v148_v41 = vsel %vm104_vm2, %v140_v39, 0.0  ;;  %v151_v43 = vsel %vm104_vm2, %v141_v42, 0.0 }
 0x11d   :  { %146 = vadd.xlane.f32.xlu0 %v145_v40  ;;  %149 = vadd.xlane.f32.xlu1 %v148_v41 }
 0x125   :  { %152 = vadd.xlane.f32.xlu1 %v151_v43 }
 0x131   :  { %183 = vperm.xlu0 %238, %v244_v46  }
 0x139   :  { %241 = vset.pattern.permute.xlu0 %v275_v60 }
 0x188   :  { %v144_v47 = vpop.xlane.xlu0 %143 }
 0x189   :  { %v160_v51 = vperm.slane %v144_v47, %v159_v48 }
 0x190   :  { %v147_v49 = vpop.xlane.xlu0 %146  ;;  %v150_v50 = vpop.xlane.xlu1 %149 }
 0x191   :  { %v161_v52 = vperm.slane %v147_v49, %v159_v48  ;;  %v162_v55 = vperm.slane %v150_v50, %v159_v48 }
 0x193   :  { %v165_v53 = vsel %vm164_vm3, %v161_v52, %v160_v51 }
 0x194   :  { %v170_v54 = vsel %vm169_vm4, %v165_v53, 0.0 }
 0x195   :  { %171 = vadd.xlane.f32.xlu2 %v170_v54 }
 0x198   :  { %v153_v56 = vpop.xlane.xlu1 %152 }
 0x199   :  { %v163_v57 = vperm.slane %v153_v56, %v159_v48 }
 0x19b   :  { %v166_v58 = vsel %vm164_vm3, %v163_v57, %v162_v55 }
 0x19c   :  { %v173_v59 = vsel %vm169_vm4, %v166_v58, 0.0 }
 0x19d   :  { %174 = vadd.xlane.f32.xlu2 %v173_v59 }
 0x1a3   :  { %v184_v61 = vpop.permute.xlu0 %183 }
 0x208   :  { %v172_v62 = vpop.xlane.xlu2 %171 }
 0x209   :  { %v186_v63 = vadd.f32 %v184_v61, %v172_v62 }
 0x20b   :  { %245 = vtanh.f32 %v186_v63 }
 0x210   :  { %v175_v0 = vpop.xlane.xlu2 %174 }
 0x211   :  { %v246_v1 = vpop.eup %245  ;;  %v187_v2 = vadd.f32 %v184_v61, %v175_v0 }
 0x212   :  { %193 = vperm.xlu1 %239, %v246_v1  }
 0x213   :  { %247 = vtanh.f32 %v187_v2 }
 0x219   :  { %v248_v3 = vpop.eup %247 }
 0x21a   :  { %196 = vperm.xlu2 %240, %v248_v3  }
 0x274   :  { %v197_v4 = vpop.permute.xlu2 %196 }
 0x275   :  { %v199_v6 = vperm.slane %v197_v4, %v159_v48 }
 0x284   :  { %v194_v5 = vpop.permute.xlu1 %193 }
 0x285   :  { %v198_v7 = vperm.slane %v194_v5, %v159_v48 }
 0x287   :  { %v200_v8 = vsel %vm164_vm3, %v199_v6, %v198_v7 }
 0x288   :  { %203 = vst.msk [vmem:[#allocation2] sm:$0x3] %vm202_vm5, %v200_v8 }
 0x289   :  { %214 = dma.vmem_to_hbm [thread:$0]  %s210_s19, 32, %s212_s22, [#allocation3]  }
 0x28a   :  { %273 = dma.done.wait [#allocation3], 32  }
 0x28b   :  { %274 = vsyncadd [#allocation3], 4294967264 }
 0x28c   :  { %219 = vsyncpa [#allocation3], 1 }

</bundles_post_ra>
